<compile_context>
chip_gen: v5e
topology: v5e:2x2
jax: 0.10.0
libtpu: 0.0.40
codegen_flags: <defaults>
</compile_context>

<pallas_src>
import functools

import numpy as np
import jax
import jax.numpy as jnp
from jax import lax
from jax.experimental import pallas as pl
from jax.experimental.pallas import tpu as pltpu


def _drw_per_cls_weights(cls_num_list, epoch, reweight_epoch=160):
    """Replicates CE_DRW.drw(epoch): deferred re-weighting class weights."""
    idx = min(epoch // reweight_epoch, 1)
    betas = [0.0, 0.9999]
    beta = betas[idx]
    cls_num = np.asarray(cls_num_list, dtype=np.float64)
    effective_num = 1.0 - np.power(beta, cls_num)
    per_cls_weights = (1.0 - beta) / effective_num
    per_cls_weights = per_cls_weights / per_cls_weights.sum() * len(cls_num_list)
    return jnp.asarray(per_cls_weights, dtype=jnp.float32)


def _ce_drw_kernel(x_ref, t_ref, w_ref, loss_ref, wsum_ref, *, n_total):
    # x_ref: [tile_n, C] logits (f32 or bf16), t_ref: [tile_n, 1] i32 labels,
    # w_ref: [1, C] f32 per-class weights (resident; constant index_map).
    # Outputs: per-tile partial sums broadcast into a lane-dense (1,8,128) slab.
    i = pl.program_id(0)
    x = x_ref[...].astype(jnp.float32)                    # [tile_n, C]
    t = t_ref[...]                                        # [tile_n, 1] int32
    w = w_ref[...].astype(jnp.float32)                    # [1, C]
    tile_n, c = x.shape

    # Mask rows of the (possibly ragged / OOB-padded) last tile.
    row_ids = i * tile_n + lax.broadcasted_iota(jnp.int32, (tile_n, 1), 0)
    valid = row_ids < n_total                             # [tile_n, 1] bool
    x = jnp.where(valid, x, 0.0)                          # keep garbage out of exp/log

    # one-hot of the target via 2-D iota compare (no gather needed on TPU)
    col_ids = lax.broadcasted_iota(jnp.int32, (tile_n, c), 1)
    onehot = (col_ids == t).astype(jnp.float32)           # [tile_n, C]

    # numerically stable log-sum-exp per row
    m = jnp.max(x, axis=-1, keepdims=True)                # [tile_n, 1]
    lse = m + jnp.log(jnp.sum(jnp.exp(x - m), axis=-1, keepdims=True))

    # x[i, target_i] and weight[target_i]
    x_t = jnp.sum(x * onehot, axis=-1, keepdims=True)     # [tile_n, 1]
    w_t = jnp.sum(w * onehot, axis=-1, keepdims=True)     # [tile_n, 1]
    w_t = jnp.where(valid, w_t, 0.0)

    per_sample = w_t * (lse - x_t)                        # [tile_n, 1]

    ones = jnp.ones((1, 8, 128), jnp.float32)             # lane-dense unmasked store
    loss_ref[...] = jnp.sum(per_sample) * ones
    wsum_ref[...] = jnp.sum(w_t) * ones


def ce_drw_forward(x, target, epoch, cls_num_list, reweight_epoch=160,
                   reduction="mean", tile_n=1024):
    """Forward of CE_DRW (use_norm=False). x: [N, C] f32/bf16, target: [N] int."""
    assert reduction in ("mean", "sum"), "only 'mean'/'sum' reductions implemented"
    n, c = x.shape
    weight = _drw_per_cls_weights(cls_num_list, epoch, reweight_epoch)   # [C]

    # --- derive the row tile ---------------------------------------------
    # Keep a double-buffered x tile well under every generation's scoped-VMEM
    # default (v5e 16 MiB, v6e/v7x 32 MiB): ~6 MiB per buffer.
    itemsize = np.dtype(x.dtype).itemsize
    sublane = max(1, 4 // itemsize) * 8          # 8 (f32), 16 (bf16), 32 (int8)
    bytes_per_row = c * itemsize
    max_rows = max(sublane, (6 * 1024 * 1024) // max(1, bytes_per_row))
    tile_n = int(min(tile_n, max_rows))
    if n <= tile_n:
        tile_n = n                               # single full-dim block: always legal
    else:
        tile_n = max(sublane, (tile_n // sublane) * sublane)
    num_tiles = pl.cdiv(n, tile_n)

    t2d = target.astype(jnp.int32).reshape(n, 1)
    w2d = weight.reshape(1, c)

    kernel = functools.partial(_ce_drw_kernel, n_total=n)
    loss_p, wsum_p = pl.pallas_call(
        kernel,
        out_shape=(jax.ShapeDtypeStruct((num_tiles, 8, 128), jnp.float32),
                   jax.ShapeDtypeStruct((num_tiles, 8, 128), jnp.float32)),
        grid=(num_tiles,),
        in_specs=[
            pl.BlockSpec((tile_n, c), lambda i: (i, 0)),
            pl.BlockSpec((tile_n, 1), lambda i: (i, 0)),
            pl.BlockSpec((1, c), lambda i: (0, 0)),   # weights DMA'd once, resident
        ],
        out_specs=(
            pl.BlockSpec((1, 8, 128), lambda i: (i, 0, 0)),
            pl.BlockSpec((1, 8, 128), lambda i: (i, 0, 0)),
        ),
        compiler_params=pltpu.CompilerParams(
            dimension_semantics=("parallel",),        # shard rows across TCs (v7x)
            vmem_limit_bytes=32 * 1024 * 1024,        # safe on v5e/v6e/v7x
        ),
    )(x, t2d, w2d)

    loss_sum = jnp.sum(loss_p[:, 0, 0])
    weight_sum = jnp.sum(wsum_p[:, 0, 0])
    if reduction == "sum":
        return loss_sum
    return loss_sum / weight_sum


def _reference(x, target, weight):
    # pure-JAX reference of F.cross_entropy(x, target, weight=weight, reduction='mean')
    x = x.astype(jnp.float32)
    lse = jax.scipy.special.logsumexp(x, axis=-1)
    x_t = jnp.take_along_axis(x, target[:, None], axis=-1)[:, 0]
    w_t = weight[target]
    return jnp.sum(w_t * (lse - x_t)) / jnp.sum(w_t)


if __name__ == "__main__":
    # Small CIFAR-10-style setup: 10 classes with a long-tailed count list.
    num_classes = 10
    batch = 50                     # deliberately NOT a multiple of the row tile
    cls_num_list = [5000, 2997, 1796, 1077, 645, 387, 232, 139, 83, 50]
    epoch = 180                    # > reweight_epoch=160 -> beta=0.9999 branch
    reweight_epoch = 160

    key = jax.random.PRNGKey(0)
    kx, kt = jax.random.split(key)
    x = jax.random.normal(kx, (batch, num_classes), dtype=jnp.float32)
    target = jax.random.randint(kt, (batch,), 0, num_classes, dtype=jnp.int32)

    # tile_n=16 forces a 4-step grid with a ragged last tile (masking path).
    loss = ce_drw_forward(x, target, epoch, cls_num_list, reweight_epoch,
                          tile_n=16)
    loss = jax.block_until_ready(loss)

    ref = _reference(x, target,
                     _drw_per_cls_weights(cls_num_list, epoch, reweight_epoch))
    assert jnp.allclose(loss, ref, rtol=1e-5, atol=1e-5), (loss, ref)

    print("KERNEL_OK")
</pallas_src>

<mosaic_0001>
module attributes {stable_mosaic.version = 11 : i64} {
  func.func @_ce_drw_kernel(%arg0: i32, %arg1: memref<16x10xf32, #tpu.memory_space<vmem>>, %arg2: memref<16x1xi32, #tpu.memory_space<vmem>>, %arg3: memref<1x10xf32, #tpu.memory_space<vmem>>, %arg4: memref<1x8x128xf32, #tpu.memory_space<vmem>>, %arg5: memref<1x8x128xf32, #tpu.memory_space<vmem>>) attributes {dimension_semantics = [#tpu.dimension_semantics<parallel>], iteration_bounds = array<i64: 4>, scalar_prefetch = 0 : i64, scratch_operands = 0 : i64, tpu.core_type = #tpu.core_type<tc>, window_params = [{transform_indices = @transform_0, window_bounds = array<i64: 16, 10>}, {transform_indices = @transform_1, window_bounds = array<i64: 16, 1>}, {pipeline_mode = #tpu.pipeline_mode<synchronous>, transform_indices = @transform_2, window_bounds = array<i64: 1, 10>}, {transform_indices = @transform_3, window_bounds = array<i64: 1, 8, 128>}, {transform_indices = @transform_4, window_bounds = array<i64: 1, 8, 128>}]} {
    %c0 = arith.constant 0 : index
    %c0_0 = arith.constant 0 : index
    %0 = vector.load %arg1[%c0, %c0_0] : memref<16x10xf32, #tpu.memory_space<vmem>>, vector<16x10xf32>
    %c0_1 = arith.constant 0 : index
    %c0_2 = arith.constant 0 : index
    %1 = vector.load %arg2[%c0_1, %c0_2] : memref<16x1xi32, #tpu.memory_space<vmem>>, vector<16x1xi32>
    %c0_3 = arith.constant 0 : index
    %c0_4 = arith.constant 0 : index
    %2 = vector.load %arg3[%c0_3, %c0_4] : memref<1x10xf32, #tpu.memory_space<vmem>>, vector<1x10xf32>
    %c16_i32 = arith.constant 16 : i32
    %3 = arith.muli %arg0, %c16_i32 : i32
    %4 = tpu.iota {dimensions = array<i32: 0>} : vector<16x1xi32>
    %5 = vector.broadcast %3 : i32 to vector<16x1xi32>
    %6 = arith.addi %5, %4 : vector<16x1xi32>
    %c50_i32 = arith.constant 50 : i32
    %7 = vector.broadcast %c50_i32 : i32 to vector<16x1xi32>
    %8 = arith.cmpi slt, %6, %7 : vector<16x1xi32>
    %cst = arith.constant 0.000000e+00 : f32
    %9 = vector.shape_cast %8 : vector<16x1xi1> to vector<16x1xi1>
    %10 = vector.broadcast %9 : vector<16x1xi1> to vector<16x10xi1>
    %11 = vector.broadcast %cst : f32 to vector<16x10xf32>
    %12 = arith.select %10, %0, %11 : vector<16x10xi1>, vector<16x10xf32>
    %13 = tpu.iota {dimensions = array<i32: 1>} : vector<16x10xi32>
    %14 = vector.broadcast %1 : vector<16x1xi32> to vector<16x10xi32>
    %15 = arith.cmpi eq, %13, %14 : vector<16x10xi32>
    %16 = arith.extui %15 : vector<16x10xi1> to vector<16x10xi32>
    %17 = arith.sitofp %16 : vector<16x10xi32> to vector<16x10xf32>
    %cst_5 = arith.constant dense<0xFF800000> : vector<16xf32>
    %18 = vector.multi_reduction <maximumf>, %12, %cst_5 [1] : vector<16x10xf32> to vector<16xf32>
    %19 = vector.shape_cast %18 : vector<16xf32> to vector<16x1xf32>
    %20 = vector.broadcast %19 : vector<16x1xf32> to vector<16x10xf32>
    %21 = arith.subf %12, %20 : vector<16x10xf32>
    %22 = math.exp %21 : vector<16x10xf32>
    %cst_6 = arith.constant dense<0.000000e+00> : vector<16xf32>
    %23 = vector.multi_reduction <add>, %22, %cst_6 [1] : vector<16x10xf32> to vector<16xf32>
    %24 = vector.shape_cast %23 : vector<16xf32> to vector<16x1xf32>
    %25 = math.log %24 : vector<16x1xf32>
    %26 = arith.addf %19, %25 : vector<16x1xf32>
    %27 = arith.mulf %12, %17 : vector<16x10xf32>
    %cst_7 = arith.constant dense<0.000000e+00> : vector<16xf32>
    %28 = vector.multi_reduction <add>, %27, %cst_7 [1] : vector<16x10xf32> to vector<16xf32>
    %29 = vector.shape_cast %28 : vector<16xf32> to vector<16x1xf32>
    %30 = vector.broadcast %2 : vector<1x10xf32> to vector<16x10xf32>
    %31 = arith.mulf %30, %17 : vector<16x10xf32>
    %cst_8 = arith.constant dense<0.000000e+00> : vector<16xf32>
    %32 = vector.multi_reduction <add>, %31, %cst_8 [1] : vector<16x10xf32> to vector<16xf32>
    %33 = vector.shape_cast %32 : vector<16xf32> to vector<16x1xf32>
    %cst_9 = arith.constant 0.000000e+00 : f32
    %34 = vector.broadcast %cst_9 : f32 to vector<16x1xf32>
    %35 = arith.select %8, %33, %34 : vector<16x1xi1>, vector<16x1xf32>
    %36 = arith.subf %26, %29 : vector<16x1xf32>
    %37 = arith.mulf %35, %36 : vector<16x1xf32>
    %cst_10 = arith.constant 1.000000e+00 : f32
    %38 = vector.broadcast %cst_10 : f32 to vector<1x8x128xf32>
    %39 = vector.shape_cast %37 : vector<16x1xf32> to vector<1x16x1xf32>
    %cst_11 = arith.constant dense<0.000000e+00> : vector<1xf32>
    %40 = vector.multi_reduction <add>, %39, %cst_11 [1, 2] : vector<1x16x1xf32> to vector<1xf32>
    %41 = vector.shape_cast %40 : vector<1xf32> to vector<1x1x1xf32>
    %42 = vector.extract %41[0, 0, 0] : f32 from vector<1x1x1xf32>
    %43 = vector.broadcast %42 : f32 to vector<1x8x128xf32>
    %44 = arith.mulf %43, %38 : vector<1x8x128xf32>
    %c0_12 = arith.constant 0 : index
    %c0_13 = arith.constant 0 : index
    %c0_14 = arith.constant 0 : index
    %45 = vector.load %arg4[%c0_12, %c0_13, %c0_14] : memref<1x8x128xf32, #tpu.memory_space<vmem>>, vector<1x8x128xf32>
    tpu.vector_store %arg4[%c0_12, %c0_13, %c0_14], %44 {strides = array<i32>} : memref<1x8x128xf32, #tpu.memory_space<vmem>>, vector<1x8x128xf32>,
    %46 = vector.shape_cast %35 : vector<16x1xf32> to vector<1x16x1xf32>
    %cst_15 = arith.constant dense<0.000000e+00> : vector<1xf32>
    %47 = vector.multi_reduction <add>, %46, %cst_15 [1, 2] : vector<1x16x1xf32> to vector<1xf32>
    %48 = vector.shape_cast %47 : vector<1xf32> to vector<1x1x1xf32>
    %49 = vector.extract %48[0, 0, 0] : f32 from vector<1x1x1xf32>
    %50 = vector.broadcast %49 : f32 to vector<1x8x128xf32>
    %51 = arith.mulf %50, %38 : vector<1x8x128xf32>
    %c0_16 = arith.constant 0 : index
    %c0_17 = arith.constant 0 : index
    %c0_18 = arith.constant 0 : index
    %52 = vector.load %arg5[%c0_16, %c0_17, %c0_18] : memref<1x8x128xf32, #tpu.memory_space<vmem>>, vector<1x8x128xf32>
    tpu.vector_store %arg5[%c0_16, %c0_17, %c0_18], %51 {strides = array<i32>} : memref<1x8x128xf32, #tpu.memory_space<vmem>>, vector<1x8x128xf32>,
    return
  }
  func.func @transform_0(%arg0: i32) -> (i32, i32) {
    %c0_i32 = arith.constant 0 : i32
    %c0_i32_0 = arith.constant 0 : i32
    return %arg0, %c0_i32 : i32, i32
  }
  func.func @transform_1(%arg0: i32) -> (i32, i32) {
    %c0_i32 = arith.constant 0 : i32
    %c0_i32_0 = arith.constant 0 : i32
    return %arg0, %c0_i32 : i32, i32
  }
  func.func @transform_2(%arg0: i32) -> (i32, i32) {
    %c0_i32 = arith.constant 0 : i32
    %c0_i32_0 = arith.constant 0 : i32
    %c0_i32_1 = arith.constant 0 : i32
    return %c0_i32, %c0_i32_0 : i32, i32
  }
  func.func @transform_3(%arg0: i32) -> (i32, i32, i32) {
    %c0_i32 = arith.constant 0 : i32
    %c0_i32_0 = arith.constant 0 : i32
    %c0_i32_1 = arith.constant 0 : i32
    return %arg0, %c0_i32, %c0_i32_0 : i32, i32, i32
  }
  func.func @transform_4(%arg0: i32) -> (i32, i32, i32) {
    %c0_i32 = arith.constant 0 : i32
    %c0_i32_0 = arith.constant 0 : i32
    %c0_i32_1 = arith.constant 0 : i32
    return %arg0, %c0_i32, %c0_i32_0 : i32, i32, i32
  }
}

</mosaic_0001>

<bundles_post_ra>
// kernel: tpu_custom_call.1
= control target key start
LH: loop header
LB: loop body
LE: loop exit
PB: predicated region body
PF: predicated region fallthrough
CT: control target
= control target key end

     0   :  { %10 = vsyncpa [#allocation3], 0  ;;  %s863_s0 = inlined_call_operand.vmem [shape: f32[50,10], index: 0, kind: input, shape index: {}]   ;;  %s864_s1 = inlined_call_operand.vmem [shape: s32[50,1], index: 1, kind: input, shape index: {}]   ;;  %s865_s2 = inlined_call_operand.vmem [shape: f32[1,10], index: 2, kind: input, shape index: {}]   ;;  %s866_s3 = inlined_call_operand.hbm [shape: f32[4,8,128], index: 3, kind: output, shape index: {0}]   ;;  %s867_s4 = inlined_call_operand.hbm [shape: f32[4,8,128], index: 4, kind: output, shape index: {1}]  }
   0x1   :  { %12 = vsyncpa [#allocation3 + $0x1], 0 }
   0x2   :  { %13 = vsyncpa [#allocation5], 0 }
   0x3   :  { %15 = vsyncpa [#allocation5 + $0x1], 0  ;;  %s726_s15 = smov 0   ;;  %s728_s16 = smov 0  }
   0x4   :  { %s730_s17 = smov 0   ;;  %s732_s18 = smov 0  }
   0x5 LB: > { %s747_s19 = sadd.s32 4294967295, %s697_s18   ;;  %s523_s20 = sadd.s32 4294967294, %s697_s18   ;;  %s697_s18 = sphi %s732_s18, %s873_s18   ;;  %s693_s17 = sphi %s730_s17, %s872_s17   ;;  %s689_s16 = sphi %s728_s16, %s871_s16   ;;  %s685_s15 = sphi %s726_s15, %s870_s15  }
   0x6   : > { %s751_s21 = sadd.s32 1, %s697_s18   ;;  %s101_s22 = sadd.s32 1, %s693_s17 }
   0x7   : > { %s98_s23 = ssub.s32 %s697_s18, %s751_s21  ;;  %p111_p0 = scmp.ne.s32.totalorder %s693_s17, %s689_s16 }
   0x8   : > { %p99_p1 = scmp.eq.s32.totalorder %s98_s23, 0  ;;  %p112_p2 = scmp.eq.s32.totalorder %s747_s19, 3 }
   0x9   : > { %p117_p3 = scmp.ne.s32.totalorder %s689_s16, %s685_s15  ;;  %p118_p4 = scmp.eq.s32.totalorder %s523_s20, 3 }
   0xa   : > { %s762_s24 = scalar_select %p99_p1, %s693_s17, %s101_s22  }
   0xb   : > { %p764_p5 = por %p112_p2, %p111_p0  ;;  %p768_p6 = por %p118_p4, %p117_p3 }
   0xc   : > { %p526_p7 = scmp.ge.s32.totalorder %s697_s18, 1  ;;  %p199_p8 = scmp.lt.s32.totalorder %s697_s18, 5 }
   0xe   : > { %p200_p9 = pnand %p526_p7, %p199_p8 }
   0xf   : > { %s529_s27 = sshll.u32 (!%p200_p9), %s747_s19, 1  ;;  %s533_s28 = sshll.u32 (!%p200_p9), %s747_s19, 4 }
  0x10   : > { %203 = sbr.rel (%p200_p9) target bundleno = 495 (0x1ef), region = 32  ;;  %p248_p10 = scmp.lt.s32.totalorder (!%p200_p9), %s529_s27, 6 }
  0x11   : > { %s807_s12 = sand.u32 (!%p200_p9), 1, %s689_s16   ;;  %s538_s14 = sshll.u32 (!%p200_p9), %s747_s19, 3 }
  0x12   : > { %s527_s13 = sshll.u32 (!%p200_p9), %s807_s12, 3  ;;  %s400_s23 = scalar_lea.hbm (!%p200_p9), %s866_s3, %s538_s14 }
  0x13   : > { %s414_s5 = scalar_lea.hbm (!%p200_p9), %s867_s4, %s538_s14  ;;  %s404_s8 = sshll.u32 (!%p200_p9), %s400_s23, 4  ;;  %s405_s8 = int_to_ptr.hbm [resolvable:$true] %s404_s8 }
  0x14   : > { %s385_s11 = scalar_lea.sflag (!%p200_p9), [#allocation3], %s807_s12  ;;  %s617_s20 = sshra.s32 (!%p200_p9), %s405_s8, 4  ;;  %s618_s20 = int_to_ptr.hbm [resolvable:$true] %s617_s20 }
  0x15   : > { %v277_v0 = vlaneseq  ;;  %v280_v1 = vstv %s533_s28  ;;  %v699_v2 = vmov 0   ;;  %s875_s27 = smov (!%p248_p10, %s529_s27), 6  ;;  %vm305_vm1 = vcmask 80896   ;;  %v594_v24 = vld [vmem:[%s865_s2] ss:$0 sm:$0xff]  ;;  %s623_s23 = scalar_lea.hbm %s866_s3, 32 }
  0x16   : > { %592 = vset.pattern.permute.xlu1 %v699_v2  ;;  %593 = vset.pattern.permute.xlu0 %v699_v2  ;;  %s530_s29 = sshll.u32 %s875_s27, 3  ;;  %v700_v17 = vmov 0.0   ;;  %vm355_vm5 = vcmask 7168   ;;  %s242_s27 = scalar_lea.vmem [#allocation4], %s527_s13 }
  0x17   : > { %v278_v3 = vshrl.u32 %v277_v0, 7  ;;  %s251_s6 = scalar_lea.vmem %s863_s0, %s530_s29  ;;  %s265_s9 = scalar_lea.vmem %s864_s1, %s530_s29  ;;  %v292_v15 = vand.u32 127, %v277_v0 }
  0x18   : > { %v271_v7 = vld [vmem:[%s251_s6] sm:$0xff]  ;;  %v272_v11 = vld [vmem:[%s251_s6 + $0x8] sm:$0xff]  ;;  %s416_s28 = sshll.u32 %s242_s27, 4  ;;  %s235_s6 = scalar_lea.vmem [#allocation2], %s527_s13  ;;  %s817_s28 = int_to_ptr.vmem [resolvable:$true] %s416_s28 }
  0x19   : > { %v776_v4 = vadd.s32 %v280_v1, %v278_v3  ;;  %v279_v5 = vadd.s32 8, %v278_v3  ;;  %v273_v8 = vld [vmem:[%s265_s9] sm:$0xff]  ;;  %v274_v13 = vld [vmem:[%s265_s9 + $0x8] sm:$0xff]  ;;  %s402_s7 = sshll.u32 %s235_s6, 4  ;;  %s418_s9 = sshll.u32 %s414_s5, 4  ;;  %s403_s7 = int_to_ptr.vmem [resolvable:$true] %s402_s7  ;;  %s819_s9 = int_to_ptr.hbm [resolvable:$true] %s418_s9 }
  0x1a   : > { %294 = vperm.xlu1 %592, %v273_v8   ;;  %s619_s13 = scalar_lea.hbm %s618_s20, 8  ;;  %p624_p0 = scmp.lt.s32.totalorder %s618_s20, %s866_s3 }
  0x1b   : > { %vm283_vm0 = vcmp.lt.s32.totalorder %v776_v4, 50  ;;  %v282_v6 = vadd.s32 %v280_v1, %v279_v5  ;;  %p620_p11 = scmp.ne.s32.totalorder %s618_s20, %s619_s13  ;;  %p625_p1 = scmp.lt.s32.totalorder %s623_s23, %s619_s13 }
  0x1c   : > { %v289_v9 = vsel %vm283_vm0, %v271_v7, 0.0 }
  0x1d   : > { %v306_v10 = vsel %vm305_vm1, %v289_v9, -inf  ;;  %vm284_vm2 = vcmp.lt.s32.totalorder %v282_v6, 50  ;;  %p621_p12 = pnand %p620_p11, %p764_p5  ;;  %p626_p2 = por %p625_p1, %p624_p0 }
  0x1e   : > { %307 = vmax.xlane.f32.xlu0 %v306_v10  ;;  %v290_v12 = vsel %vm284_vm2, %v272_v11, 0.0 }
  0x1f   : > { %v309_v14 = vsel %vm305_vm1, %v290_v12, -inf  ;;  %p622_p13 = pneg %p621_p12 }
  0x21   : > { %p627_p3 = pnand %p626_p2, %p622_p13 }
  0x22   : > { %297 = vperm.xlu1 %592, %v274_v13  }
  0x26   : > { %310 = vmax.xlane.f32.xlu0 %v309_v14 }
  0x8c   : > { %v295_v16 = vpop.permute.xlu1 %294 }
  0x8d   : > { %vm299_vm3 = vcmp.eq.s32.totalorder %v292_v15, %v295_v16 }
  0x8e   : > { %v534_v18 = vsel %vm299_vm3, 1.0, %v700_v17 }
  0x8f   : > { %v330_v20 = vmul.f32 %v534_v18, %v289_v9  ;;  %v341_v38 = vmul.f32 %v594_v24, %v534_v18 }
  0x91   : > { %v308_v19 = vpop.xlane.xlu0 %307  ;;  %v332_v22 = vsel %vm305_vm1, %v330_v20, 0.0  ;;  %v343_v39 = vsel %vm305_vm1, %v341_v38, 0.0 }
  0x92   : > { %v312_v21 = vsub.f32 %v289_v9, %v308_v19  ;;  %333 = vadd.xlane.f32.xlu0 %v332_v22 }
  0x94   : > { %v314_v23 = vmul.f32 1.442695, %v312_v21  ;;  %v298_v25 = vpop.permute.xlu1 %297 }
  0x95   : > { %vm300_vm4 = vcmp.eq.s32.totalorder %v292_v15, %v298_v25 }
  0x96   : > { %595 = vpow2.f32 %v314_v23  ;;  %v535_v26 = vsel %vm300_vm4, 1.0, %v700_v17 }
  0x97   : > { %v331_v28 = vmul.f32 %v535_v26, %v290_v12  ;;  %v342_v29 = vmul.f32 %v594_v24, %v535_v26 }
  0x99   : > { %v311_v27 = vpop.xlane.xlu0 %310  ;;  %v335_v31 = vsel %vm305_vm1, %v331_v28, 0.0  ;;  %v346_v32 = vsel %vm305_vm1, %v342_v29, 0.0 }
  0x9a   : > { %v313_v30 = vsub.f32 %v290_v12, %v311_v27  ;;  %336 = vadd.xlane.f32.xlu1 %v335_v31  ;;  %347 = vadd.xlane.f32.xlu0 %v346_v32 }
  0x9c   : > { %v596_v33 = vpop.eup %595  ;;  %v316_v34 = vmul.f32 1.442695, %v313_v30 }
  0x9d   : > { %v318_v35 = vsel %vm305_vm1, %v596_v33, 0.0 }
  0x9e   : > { %597 = vpow2.f32 %v316_v34  ;;  %319 = vadd.xlane.f32.xlu2 %v318_v35 }
  0xa4   : > { %v598_v36 = vpop.eup %597 }
  0xa5   : > { %v321_v37 = vsel %vm305_vm1, %v598_v36, 0.0 }
  0xa6   : > { %322 = vadd.xlane.f32.xlu2 %v321_v37 }
  0xae   : > { %344 = vadd.xlane.f32.xlu2 %v343_v39 }
 0x105   : > { %v334_v41 = vpop.xlane.xlu0 %333 }
 0x10d   : > { %v348_v45 = vpop.xlane.xlu0 %347  ;;  %v337_v56 = vpop.xlane.xlu1 %336 }
 0x10e   : > { %v350_v48 = vsel %vm284_vm2, %v348_v45, 0.0 }
 0x10f   : > { %v371_v54 = vsel %vm355_vm5, %v350_v48, 0.0 }
 0x111   : > { %v320_v40 = vpop.xlane.xlu2 %319 }
 0x112   : > { %599 = vlog2.f32 %v320_v40 }
 0x118   : > { %v600_v42 = vpop.eup %599 }
 0x119   : > { %v323_v43 = vpop.xlane.xlu2 %322  ;;  %v325_v44 = vmul.f32 0.6931472, %v600_v42 }
 0x11a   : > { %601 = vlog2.f32 %v323_v43 }
 0x11b   : > { %v328_v46 = vadd.f32 %v325_v44, %v308_v19 }
 0x11d   : > { %v351_v52 = vsub.f32 %v328_v46, %v334_v41 }
 0x120   : > { %v602_v47 = vpop.eup %601 }
 0x121   : > { %v327_v49 = vmul.f32 0.6931472, %v602_v47  ;;  %v345_v50 = vpop.xlane.xlu2 %344 }
 0x122   : > { %v349_v51 = vsel %vm283_vm0, %v345_v50, 0.0 }
 0x123   : > { %v329_v53 = vadd.f32 %v327_v49, %v311_v27  ;;  %v370_v55 = vsel %vm355_vm5, %v349_v51, 0.0  ;;  %v353_v59 = vmul.f32 %v351_v52, %v349_v51 }
 0x124   : > { %v372_v57 = vadd.f32 %v371_v54, %v370_v55 }
 0x125   : > { %v352_v58 = vsub.f32 %v329_v53, %v337_v56  ;;  %v356_v61 = vsel %vm355_vm5, %v353_v59, 0.0 }
 0x126   : > { %373 = vadd.xlane.f32.xlu0 %v372_v57 }
 0x127   : > { %v354_v60 = vmul.f32 %v352_v58, %v350_v48 }
 0x129   : > { %v357_v62 = vsel %vm355_vm5, %v354_v60, 0.0 }
 0x12a   : > { %v358_v63 = vadd.f32 %v357_v62, %v356_v61 }
 0x12c   : > { %359 = vadd.xlane.f32.xlu2 %v358_v63 }
 0x199   : > { %v374_v0 = vpop.xlane.xlu0 %373 }
 0x19a   : > { %v375_v1 = vrot.slane %v374_v0, 4 }
 0x19c   : > { %v376_v2 = vadd.f32 %v375_v1, %v374_v0 }
 0x19e   : > { %v377_v3 = vrot.slane %v376_v2, 2 }
 0x19f   : > { %v360_v4 = vpop.xlane.xlu2 %359 }
 0x1a0   : > { %v361_v5 = vrot.slane %v360_v4, 4  ;;  %v378_v7 = vadd.f32 %v377_v3, %v376_v2 }
 0x1a2   : > { %v362_v6 = vadd.f32 %v361_v5, %v360_v4  ;;  %v379_v10 = vrot.slane %v378_v7, 1 }
 0x1a4   : > { %v363_v8 = vrot.slane %v362_v6, 2  ;;  %v380_v13 = vadd.f32 %v379_v10, %v378_v7 }
 0x1a6   : > { %v364_v9 = vadd.f32 %v363_v8, %v362_v6 }
 0x1a8   : > { %v365_v11 = vrot.slane %v364_v9, 1 }
 0x1aa   : > { %v366_v12 = vadd.f32 %v365_v11, %v364_v9 }
 0x1ac   : > { %542 = vpush %v366_v12 }
 0x1ad   : > { %544 = vpush %v380_v13 }
 0x1dd   : > { %s543_s19 = spop %542 }
 0x1de   : > { %v368_v14 = vstv %s543_s19  ;;  %s545_s10 = spop %544 }
 0x1df   : > { %369 = vst [vmem:[%s235_s6] sm:$0xff] %v368_v14  ;;  %v382_v15 = vstv %s545_s10 }
 0x1e0   : > { %383 = vst [vmem:[%s242_s27] sm:$0xff] %v382_v15 }
 0x1e1   : > { %630 = shalt.err (!%p627_p3)
}
 0x1e2   : > { %546 = dma.vmem_to_hbm [thread:$0]  (%p764_p5), %s403_s7, 128, %s405_s8, %s385_s11  }
 0x1e3   : > { %s390_s27 = scalar_lea.sflag [#allocation5], %s807_s12  ;;  %s645_s5 = sshra.s32 %s819_s9, 4  ;;  %s646_s5 = int_to_ptr.hbm [resolvable:$true] %s645_s5 }
 0x1e4   : > { %s647_s6 = scalar_lea.hbm %s646_s5, 8  ;;  %s651_s20 = scalar_lea.hbm %s867_s4, 32 }
 0x1e5   : > { %p648_p4 = scmp.ne.s32.totalorder %s646_s5, %s647_s6  ;;  %p652_p9 = scmp.lt.s32.totalorder %s646_s5, %s867_s4 }
 0x1e6   : > { %p653_p10 = scmp.lt.s32.totalorder %s651_s20, %s647_s6 }
 0x1e7   : > { %p649_p7 = pnand %p648_p4, %p764_p5 }
 0x1e8   : > { %p654_p11 = por %p653_p10, %p652_p9 }
 0x1e9   : > { %p650_p8 = pneg %p649_p7 }
 0x1eb   : > { %p655_p12 = pnand %p654_p11, %p650_p8 }
 0x1ed   : > { %658 = shalt.err (!%p655_p12)
}
 0x1ee   : > { %547 = dma.vmem_to_hbm [thread:$0]  (%p764_p5), %s817_s28, 128, %s819_s9, %s390_s27  }
 0x1ef PF: > { %p557_p13 = scmp.ge.s32.totalorder %s697_s18, 2  ;;  %s430_s12 = sand.u32 1, %s685_s15  }
 0x1f0   : > { %s431_s7 = scalar_lea.sflag [#allocation3], %s430_s12 }
 0x1f1   : > { %p551_p0 = pnand %p557_p13, %p768_p6 }
 0x1f3   : > { %p552_p1 = pneg %p551_p0 }
 0x1f5   : > { %676 = dma.done.wait (%p552_p1), %s431_s7, 128  }
 0x1f6   : > { %678 = vsyncadd (%p552_p1), %s431_s7, 4294967168  ;;  %s441_s8 = scalar_lea.sflag [#allocation5], %s430_s12 }
 0x1f7   : > { %680 = dma.done.wait (%p552_p1), %s441_s8, 128  }
 0x1f8   : > { %682 = vsyncadd (%p552_p1), %s441_s8, 4294967168  ;;  %p18_p5 = scmp.ge.s32.totalorder %s751_s21, 6   ;;  %s870_s15 = smov %s689_s16 }
 0x1f9   : > { %s871_s16 = smov %s693_s17  ;;  %s872_s17 = smov %s762_s24 }
 0x1fa   : > { %s873_s18 = smov %s751_s21  ;;  %20 = sbr.rel (!%p18_p5) target bundleno = 5 (0x5), region = 87 }
 0x1ff   :  { %447 = vsyncpa [#allocation3], 1 }
 0x200   :  { %449 = vsyncpa [#allocation3 + $0x1], 1 }
 0x201   :  { %450 = vsyncpa [#allocation5], 1 }
 0x202   :  { %452 = vsyncpa [#allocation5 + $0x1], 1 }

</bundles_post_ra>
